<compile_context>
chip_gen: v5e
topology: v5e:2x2
jax: 0.10.0
libtpu: 0.0.40
codegen_flags: <defaults>
</compile_context>

<pallas_src>
import jax
import jax.numpy as jnp
from jax.experimental import pallas as pl
from jax.experimental.pallas import tpu as pltpu


def _round_up(x, m):
    return ((x + m - 1) // m) * m


def gtc_kernel(edges_ref, obj_ref, pred_ref,
               w1a_s_ref, w1a_p_ref, w1a_o_ref, b1a_ref,
               w1b_s_ref, b1b_s_ref, w1b_p_ref, b1b_p_ref, w1b_o_ref, b1b_o_ref,
               w2a_ref, b2a_ref, w2b_ref, b2b_ref,
               new_obj_ref, new_p_ref):
    T = pred_ref.shape[0]
    O = obj_ref.shape[0]

    # Packed edge indices: one (T, 2) int32 load, lane-sliced into s/o columns.
    e = edges_ref[...]                       # (T, 2) int32
    s_idx = e[:, 0:1]                        # (T, 1)
    o_idx = e[:, 1:2]                        # (T, 1)

    # One-hot selection matrices (T, O). Padded rows have index -1 -> all-zero.
    iota_o = jax.lax.broadcasted_iota(jnp.int32, (T, O), 1)
    s_oh = (iota_o == s_idx).astype(jnp.float32)
    o_oh = (iota_o == o_idx).astype(jnp.float32)

    obj = obj_ref[...]                       # (O, Din)

    # --- net1 layer 1, with the gather folded into the Linear ---------------
    # relu( gather(obj, s) @ W_s + pred @ W_p + gather(obj, o) @ W_o + b )
    #   == relu( s_oh @ (obj @ W_s) + pred @ W_p + o_oh @ (obj @ W_o) + b )
    obj_s = jnp.dot(obj, w1a_s_ref[...], preferred_element_type=jnp.float32)   # (O, Hp)
    obj_o = jnp.dot(obj, w1a_o_ref[...], preferred_element_type=jnp.float32)   # (O, Hp)
    pred_h = jnp.dot(pred_ref[...], w1a_p_ref[...],
                     preferred_element_type=jnp.float32)                        # (T, Hp)
    h1 = jnp.maximum(
        jnp.dot(s_oh, obj_s, preferred_element_type=jnp.float32)
        + pred_h
        + jnp.dot(o_oh, obj_o, preferred_element_type=jnp.float32)
        + b1a_ref[...],
        0.0)                                                                    # (T, Hp)

    # --- net1 layer 2 as three independent, lane-aligned GEMMs --------------
    new_s = jnp.maximum(
        jnp.dot(h1, w1b_s_ref[...], preferred_element_type=jnp.float32)
        + b1b_s_ref[...], 0.0)                                                  # (T, Hp)
    new_p = jnp.maximum(
        jnp.dot(h1, w1b_p_ref[...], preferred_element_type=jnp.float32)
        + b1b_p_ref[...], 0.0)                                                  # (T, Dp)
    new_o = jnp.maximum(
        jnp.dot(h1, w1b_o_ref[...], preferred_element_type=jnp.float32)
        + b1b_o_ref[...], 0.0)                                                  # (T, Hp)

    new_p_ref[...] = new_p

    # --- scatter_add pooling via transposed one-hot matmuls -----------------
    dnums = (((0,), (0,)), ((), ()))
    pooled = (
        jax.lax.dot_general(s_oh, new_s, dnums, preferred_element_type=jnp.float32)
        + jax.lax.dot_general(o_oh, new_o, dnums, preferred_element_type=jnp.float32)
    )                                                                           # (O, Hp)

    # 'avg' pooling: per-object edge counts out of the MXU, reciprocal-multiply.
    ones_t = jnp.ones((T, 1), jnp.float32)
    counts = jax.lax.dot_general(s_oh + o_oh, ones_t, dnums,
                                 preferred_element_type=jnp.float32)            # (O, 1)
    inv = pl.reciprocal(jnp.maximum(counts, 1.0), approx=False)
    pooled = pooled * inv

    # --- net2 -----------------------------------------------------------------
    h2 = jnp.maximum(
        jnp.dot(pooled, w2a_ref[...], preferred_element_type=jnp.float32)
        + b2a_ref[...], 0.0)                                                    # (O, Hp)
    new_obj_ref[...] = jnp.maximum(
        jnp.dot(h2, w2b_ref[...], preferred_element_type=jnp.float32)
        + b2b_ref[...], 0.0)                                                    # (O, Dp)


def graph_triple_conv(obj_vecs, pred_vecs, edges, params):
    """obj_vecs (O, Din) f32, pred_vecs (T, Din) f32, edges (T, 2) int32."""
    O, Din = obj_vecs.shape
    T = pred_vecs.shape[0]
    H = params["w1a"].shape[1]
    Dout = params["w2b"].shape[1]

    LANE, SUB = 128, 8
    Hp = _round_up(H, LANE)       # lane-dense hidden width
    Dp = _round_up(Dout, LANE)    # lane-dense output width
    Op = _round_up(O, SUB)
    Tp = _round_up(T, SUB)

    def pad2(x, rows, cols):
        return jnp.pad(x, ((0, rows - x.shape[0]), (0, cols - x.shape[1])))

    # Activations: zero-pad rows; padded triples get edge index -1 (match nothing).
    obj_pd = pad2(obj_vecs, Op, Din)
    pred_pd = pad2(pred_vecs, Tp, Din)
    edges_pd = jnp.pad(edges.astype(jnp.int32), ((0, Tp - T), (0, 0)),
                       constant_values=-1)

    # net1 first Linear: split (3*Din, H) row-wise into s / p / o blocks, pad out-dim.
    w1a, b1a = params["w1a"], params["b1a"]
    w1a_s = pad2(w1a[:Din], Din, Hp)
    w1a_p = pad2(w1a[Din:2 * Din], Din, Hp)
    w1a_o = pad2(w1a[2 * Din:], Din, Hp)
    b1a_pd = pad2(b1a, 1, Hp)

    # net1 second Linear: split (H, 2H+Dout) column-wise into s / p / o outputs.
    w1b, b1b = params["w1b"], params["b1b"]
    w1b_s = pad2(w1b[:, :H], Hp, Hp)
    w1b_p = pad2(w1b[:, H:H + Dout], Hp, Dp)
    w1b_o = pad2(w1b[:, H + Dout:2 * H + Dout], Hp, Hp)
    b1b_s = pad2(b1b[:, :H], 1, Hp)
    b1b_p = pad2(b1b[:, H:H + Dout], 1, Dp)
    b1b_o = pad2(b1b[:, H + Dout:2 * H + Dout], 1, Hp)

    # net2.
    w2a_pd = pad2(params["w2a"], Hp, Hp)
    b2a_pd = pad2(params["b2a"], 1, Hp)
    w2b_pd = pad2(params["w2b"], Hp, Dp)
    b2b_pd = pad2(params["b2b"], 1, Dp)

    vmem = pl.BlockSpec(memory_space=pltpu.MemorySpace.VMEM)
    inputs = (edges_pd, obj_pd, pred_pd,
              w1a_s, w1a_p, w1a_o, b1a_pd,
              w1b_s, b1b_s, w1b_p, b1b_p, w1b_o, b1b_o,
              w2a_pd, b2a_pd, w2b_pd, b2b_pd)

    new_obj_pd, new_p_pd = pl.pallas_call(
        gtc_kernel,
        out_shape=(jax.ShapeDtypeStruct((Op, Dp), jnp.float32),
                   jax.ShapeDtypeStruct((Tp, Dp), jnp.float32)),
        in_specs=[vmem] * len(inputs),
        out_specs=(vmem, vmem),
    )(*inputs)

    # Slice the lane/sublane padding back off.
    return new_obj_pd[:O, :Dout], new_p_pd[:T, :Dout]


def init_params(key, input_dim, hidden_dim, output_dim):
    """Deterministic kaiming-normal-like init; weights stored (in, out)."""
    def lin(key, fan_in, fan_out):
        w = jax.random.normal(key, (fan_in, fan_out), jnp.float32) * jnp.sqrt(2.0 / fan_in)
        b = jnp.zeros((1, fan_out), jnp.float32)
        return w, b

    k = jax.random.split(key, 4)
    w1a, b1a = lin(k[0], 3 * input_dim, hidden_dim)
    w1b, b1b = lin(k[1], hidden_dim, 2 * hidden_dim + output_dim)
    w2a, b2a = lin(k[2], hidden_dim, hidden_dim)
    w2b, b2b = lin(k[3], hidden_dim, output_dim)
    return dict(w1a=w1a, b1a=b1a, w1b=w1b, b1b=b1b,
                w2a=w2a, b2a=b2a, w2b=w2b, b2b=b2b)


def graph_triple_conv_ref(obj_vecs, pred_vecs, edges, params):
    """Pure-JAX reference mirroring the PyTorch forward."""
    O = obj_vecs.shape[0]
    H = params["w1a"].shape[1]
    Dout = params["w2b"].shape[1]
    s_idx = edges[:, 0]
    o_idx = edges[:, 1]
    cur_t = jnp.concatenate([obj_vecs[s_idx], pred_vecs, obj_vecs[o_idx]], axis=1)
    h1 = jax.nn.relu(cur_t @ params["w1a"] + params["b1a"])
    new_t = jax.nn.relu(h1 @ params["w1b"] + params["b1b"])
    new_s, new_p, new_o = new_t[:, :H], new_t[:, H:H + Dout], new_t[:, H + Dout:2 * H + Dout]
    pooled = jnp.zeros((O, H), jnp.float32)
    pooled = pooled.at[s_idx].add(new_s).at[o_idx].add(new_o)
    counts = jnp.zeros((O,), jnp.float32).at[s_idx].add(1.0).at[o_idx].add(1.0)
    pooled = pooled / jnp.maximum(counts, 1.0)[:, None]
    h2 = jax.nn.relu(pooled @ params["w2a"] + params["b2a"])
    new_obj = jax.nn.relu(h2 @ params["w2b"] + params["b2b"])
    return new_obj, new_p


if __name__ == "__main__":
    O, T = 8, 16          # objects, triples
    Din, H, Dout = 32, 64, 32

    key = jax.random.PRNGKey(0)
    k_obj, k_pred, k_edge, k_par = jax.random.split(key, 4)

    obj_vecs = jax.random.normal(k_obj, (O, Din), jnp.float32)
    pred_vecs = jax.random.normal(k_pred, (T, Din), jnp.float32)
    edges = jax.random.randint(k_edge, (T, 2), 0, O, jnp.int32)
    params = init_params(k_par, Din, H, Dout)

    new_obj, new_p = graph_triple_conv(obj_vecs, pred_vecs, edges, params)
    jax.block_until_ready((new_obj, new_p))

    ref_obj, ref_p = graph_triple_conv_ref(obj_vecs, pred_vecs, edges, params)
    assert new_obj.shape == (O, Dout) and new_p.shape == (T, Dout)
    assert jnp.allclose(new_obj, ref_obj, atol=1e-4, rtol=1e-4)
    assert jnp.allclose(new_p, ref_p, atol=1e-4, rtol=1e-4)
    print("KERNEL_OK")
</pallas_src>

<mosaic_0001>
module attributes {stable_mosaic.version = 11 : i64} {
  func.func @gtc_kernel(%arg0: memref<16x2xi32, #tpu.memory_space<vmem>>, %arg1: memref<8x32xf32, #tpu.memory_space<vmem>>, %arg2: memref<16x32xf32, #tpu.memory_space<vmem>>, %arg3: memref<32x128xf32, #tpu.memory_space<vmem>>, %arg4: memref<32x128xf32, #tpu.memory_space<vmem>>, %arg5: memref<32x128xf32, #tpu.memory_space<vmem>>, %arg6: memref<1x128xf32, #tpu.memory_space<vmem>>, %arg7: memref<128x128xf32, #tpu.memory_space<vmem>>, %arg8: memref<1x128xf32, #tpu.memory_space<vmem>>, %arg9: memref<128x128xf32, #tpu.memory_space<vmem>>, %arg10: memref<1x128xf32, #tpu.memory_space<vmem>>, %arg11: memref<128x128xf32, #tpu.memory_space<vmem>>, %arg12: memref<1x128xf32, #tpu.memory_space<vmem>>, %arg13: memref<128x128xf32, #tpu.memory_space<vmem>>, %arg14: memref<1x128xf32, #tpu.memory_space<vmem>>, %arg15: memref<128x128xf32, #tpu.memory_space<vmem>>, %arg16: memref<1x128xf32, #tpu.memory_space<vmem>>, %arg17: memref<8x128xf32, #tpu.memory_space<vmem>>, %arg18: memref<16x128xf32, #tpu.memory_space<vmem>>) attributes {dimension_semantics = [], scalar_prefetch = 0 : i64, scratch_operands = 0 : i64, tpu.core_type = #tpu.core_type<tc>} {
    %c0 = arith.constant 0 : index
    %c0_0 = arith.constant 0 : index
    %0 = vector.load %arg0[%c0, %c0_0] : memref<16x2xi32, #tpu.memory_space<vmem>>, vector<16x2xi32>
    %1 = vector.extract_strided_slice %0 {offsets = [0, 0], sizes = [16, 1], strides = [1, 1]} : vector<16x2xi32> to vector<16x1xi32>
    %2 = vector.extract_strided_slice %0 {offsets = [0, 1], sizes = [16, 1], strides = [1, 1]} : vector<16x2xi32> to vector<16x1xi32>
    %3 = tpu.iota {dimensions = array<i32: 1>} : vector<16x8xi32>
    %4 = vector.broadcast %1 : vector<16x1xi32> to vector<16x8xi32>
    %5 = arith.cmpi eq, %3, %4 : vector<16x8xi32>
    %6 = arith.extui %5 : vector<16x8xi1> to vector<16x8xi32>
    %7 = arith.sitofp %6 : vector<16x8xi32> to vector<16x8xf32>
    %8 = vector.broadcast %2 : vector<16x1xi32> to vector<16x8xi32>
    %9 = arith.cmpi eq, %3, %8 : vector<16x8xi32>
    %10 = arith.extui %9 : vector<16x8xi1> to vector<16x8xi32>
    %11 = arith.sitofp %10 : vector<16x8xi32> to vector<16x8xf32>
    %c0_1 = arith.constant 0 : index
    %c0_2 = arith.constant 0 : index
    %12 = vector.load %arg1[%c0_1, %c0_2] : memref<8x32xf32, #tpu.memory_space<vmem>>, vector<8x32xf32>
    %c0_3 = arith.constant 0 : index
    %c0_4 = arith.constant 0 : index
    %13 = vector.load %arg3[%c0_3, %c0_4] : memref<32x128xf32, #tpu.memory_space<vmem>>, vector<32x128xf32>
    %cst = arith.constant dense<0.000000e+00> : vector<8x128xf32>
    %14 = tpu.matmul %12, %13, %cst {dimension_numbers = #tpu.dot_dimension_numbers<[1], [0], [0], [1], [0, 0, 1, 1], [], []>} : vector<8x32xf32>, vector<32x128xf32>, vector<8x128xf32> -> vector<8x128xf32>
    %c0_5 = arith.constant 0 : index
    %c0_6 = arith.constant 0 : index
    %15 = vector.load %arg5[%c0_5, %c0_6] : memref<32x128xf32, #tpu.memory_space<vmem>>, vector<32x128xf32>
    %cst_7 = arith.constant dense<0.000000e+00> : vector<8x128xf32>
    %16 = tpu.matmul %12, %15, %cst_7 {dimension_numbers = #tpu.dot_dimension_numbers<[1], [0], [0], [1], [0, 0, 1, 1], [], []>} : vector<8x32xf32>, vector<32x128xf32>, vector<8x128xf32> -> vector<8x128xf32>
    %c0_8 = arith.constant 0 : index
    %c0_9 = arith.constant 0 : index
    %17 = vector.load %arg2[%c0_8, %c0_9] : memref<16x32xf32, #tpu.memory_space<vmem>>, vector<16x32xf32>
    %c0_10 = arith.constant 0 : index
    %c0_11 = arith.constant 0 : index
    %18 = vector.load %arg4[%c0_10, %c0_11] : memref<32x128xf32, #tpu.memory_space<vmem>>, vector<32x128xf32>
    %cst_12 = arith.constant dense<0.000000e+00> : vector<16x128xf32>
    %19 = tpu.matmul %17, %18, %cst_12 {dimension_numbers = #tpu.dot_dimension_numbers<[1], [0], [0], [1], [0, 0, 1, 1], [], []>} : vector<16x32xf32>, vector<32x128xf32>, vector<16x128xf32> -> vector<16x128xf32>
    %cst_13 = arith.constant dense<0.000000e+00> : vector<16x128xf32>
    %20 = tpu.matmul %7, %14, %cst_13 {dimension_numbers = #tpu.dot_dimension_numbers<[1], [0], [0], [1], [0, 0, 1, 1], [], []>} : vector<16x8xf32>, vector<8x128xf32>, vector<16x128xf32> -> vector<16x128xf32>
    %21 = arith.addf %20, %19 : vector<16x128xf32>
    %cst_14 = arith.constant dense<0.000000e+00> : vector<16x128xf32>
    %22 = tpu.matmul %11, %16, %cst_14 {dimension_numbers = #tpu.dot_dimension_numbers<[1], [0], [0], [1], [0, 0, 1, 1], [], []>} : vector<16x8xf32>, vector<8x128xf32>, vector<16x128xf32> -> vector<16x128xf32>
    %23 = arith.addf %21, %22 : vector<16x128xf32>
    %c0_15 = arith.constant 0 : index
    %c0_16 = arith.constant 0 : index
    %24 = vector.load %arg6[%c0_15, %c0_16] : memref<1x128xf32, #tpu.memory_space<vmem>>, vector<1x128xf32>
    %25 = vector.broadcast %24 : vector<1x128xf32> to vector<16x128xf32>
    %26 = arith.addf %23, %25 : vector<16x128xf32>
    %cst_17 = arith.constant 0.000000e+00 : f32
    %27 = vector.broadcast %cst_17 : f32 to vector<16x128xf32>
    %28 = arith.maximumf %26, %27 : vector<16x128xf32>
    %c0_18 = arith.constant 0 : index
    %c0_19 = arith.constant 0 : index
    %29 = vector.load %arg7[%c0_18, %c0_19] : memref<128x128xf32, #tpu.memory_space<vmem>>, vector<128x128xf32>
    %cst_20 = arith.constant dense<0.000000e+00> : vector<16x128xf32>
    %30 = tpu.matmul %28, %29, %cst_20 {dimension_numbers = #tpu.dot_dimension_numbers<[1], [0], [0], [1], [0, 0, 1, 1], [], []>} : vector<16x128xf32>, vector<128x128xf32>, vector<16x128xf32> -> vector<16x128xf32>
    %c0_21 = arith.constant 0 : index
    %c0_22 = arith.constant 0 : index
    %31 = vector.load %arg8[%c0_21, %c0_22] : memref<1x128xf32, #tpu.memory_space<vmem>>, vector<1x128xf32>
    %32 = vector.broadcast %31 : vector<1x128xf32> to vector<16x128xf32>
    %33 = arith.addf %30, %32 : vector<16x128xf32>
    %cst_23 = arith.constant 0.000000e+00 : f32
    %34 = vector.broadcast %cst_23 : f32 to vector<16x128xf32>
    %35 = arith.maximumf %33, %34 : vector<16x128xf32>
    %c0_24 = arith.constant 0 : index
    %c0_25 = arith.constant 0 : index
    %36 = vector.load %arg9[%c0_24, %c0_25] : memref<128x128xf32, #tpu.memory_space<vmem>>, vector<128x128xf32>
    %cst_26 = arith.constant dense<0.000000e+00> : vector<16x128xf32>
    %37 = tpu.matmul %28, %36, %cst_26 {dimension_numbers = #tpu.dot_dimension_numbers<[1], [0], [0], [1], [0, 0, 1, 1], [], []>} : vector<16x128xf32>, vector<128x128xf32>, vector<16x128xf32> -> vector<16x128xf32>
    %c0_27 = arith.constant 0 : index
    %c0_28 = arith.constant 0 : index
    %38 = vector.load %arg10[%c0_27, %c0_28] : memref<1x128xf32, #tpu.memory_space<vmem>>, vector<1x128xf32>
    %39 = vector.broadcast %38 : vector<1x128xf32> to vector<16x128xf32>
    %40 = arith.addf %37, %39 : vector<16x128xf32>
    %cst_29 = arith.constant 0.000000e+00 : f32
    %41 = vector.broadcast %cst_29 : f32 to vector<16x128xf32>
    %42 = arith.maximumf %40, %41 : vector<16x128xf32>
    %c0_30 = arith.constant 0 : index
    %c0_31 = arith.constant 0 : index
    %43 = vector.load %arg11[%c0_30, %c0_31] : memref<128x128xf32, #tpu.memory_space<vmem>>, vector<128x128xf32>
    %cst_32 = arith.constant dense<0.000000e+00> : vector<16x128xf32>
    %44 = tpu.matmul %28, %43, %cst_32 {dimension_numbers = #tpu.dot_dimension_numbers<[1], [0], [0], [1], [0, 0, 1, 1], [], []>} : vector<16x128xf32>, vector<128x128xf32>, vector<16x128xf32> -> vector<16x128xf32>
    %c0_33 = arith.constant 0 : index
    %c0_34 = arith.constant 0 : index
    %45 = vector.load %arg12[%c0_33, %c0_34] : memref<1x128xf32, #tpu.memory_space<vmem>>, vector<1x128xf32>
    %46 = vector.broadcast %45 : vector<1x128xf32> to vector<16x128xf32>
    %47 = arith.addf %44, %46 : vector<16x128xf32>
    %cst_35 = arith.constant 0.000000e+00 : f32
    %48 = vector.broadcast %cst_35 : f32 to vector<16x128xf32>
    %49 = arith.maximumf %47, %48 : vector<16x128xf32>
    %c0_36 = arith.constant 0 : index
    %c0_37 = arith.constant 0 : index
    %50 = vector.load %arg18[%c0_36, %c0_37] : memref<16x128xf32, #tpu.memory_space<vmem>>, vector<16x128xf32>
    tpu.vector_store %arg18[%c0_36, %c0_37], %42 {strides = array<i32>} : memref<16x128xf32, #tpu.memory_space<vmem>>, vector<16x128xf32>,
    %cst_38 = arith.constant dense<0.000000e+00> : vector<8x128xf32>
    %51 = tpu.matmul %7, %35, %cst_38 {dimension_numbers = #tpu.dot_dimension_numbers<[0], [0], [1], [1], [0, 1, 1, 1], [], []>} : vector<16x8xf32>, vector<16x128xf32>, vector<8x128xf32> -> vector<8x128xf32>
    %cst_39 = arith.constant dense<0.000000e+00> : vector<8x128xf32>
    %52 = tpu.matmul %11, %49, %cst_39 {dimension_numbers = #tpu.dot_dimension_numbers<[0], [0], [1], [1], [0, 1, 1, 1], [], []>} : vector<16x8xf32>, vector<16x128xf32>, vector<8x128xf32> -> vector<8x128xf32>
    %53 = arith.addf %51, %52 : vector<8x128xf32>
    %cst_40 = arith.constant 1.000000e+00 : f32
    %54 = vector.broadcast %cst_40 : f32 to vector<16x1xf32>
    %55 = arith.addf %7, %11 : vector<16x8xf32>
    %cst_41 = arith.constant dense<0.000000e+00> : vector<8x1xf32>
    %56 = tpu.matmul %55, %54, %cst_41 {dimension_numbers = #tpu.dot_dimension_numbers<[0], [0], [1], [1], [0, 1, 1, 1], [], []>} : vector<16x8xf32>, vector<16x1xf32>, vector<8x1xf32> -> vector<8x1xf32>
    %cst_42 = arith.constant 1.000000e+00 : f32
    %57 = vector.broadcast %cst_42 : f32 to vector<8x1xf32>
    %58 = arith.maximumf %56, %57 : vector<8x1xf32>
    %59 = tpu.reciprocal %58 : vector<8x1xf32> -> vector<8x1xf32>
    %60 = vector.broadcast %59 : vector<8x1xf32> to vector<8x128xf32>
    %61 = arith.mulf %53, %60 : vector<8x128xf32>
    %c0_43 = arith.constant 0 : index
    %c0_44 = arith.constant 0 : index
    %62 = vector.load %arg13[%c0_43, %c0_44] : memref<128x128xf32, #tpu.memory_space<vmem>>, vector<128x128xf32>
    %cst_45 = arith.constant dense<0.000000e+00> : vector<8x128xf32>
    %63 = tpu.matmul %61, %62, %cst_45 {dimension_numbers = #tpu.dot_dimension_numbers<[1], [0], [0], [1], [0, 0, 1, 1], [], []>} : vector<8x128xf32>, vector<128x128xf32>, vector<8x128xf32> -> vector<8x128xf32>
    %c0_46 = arith.constant 0 : index
    %c0_47 = arith.constant 0 : index
    %64 = vector.load %arg14[%c0_46, %c0_47] : memref<1x128xf32, #tpu.memory_space<vmem>>, vector<1x128xf32>
    %65 = vector.broadcast %64 : vector<1x128xf32> to vector<8x128xf32>
    %66 = arith.addf %63, %65 : vector<8x128xf32>
    %cst_48 = arith.constant 0.000000e+00 : f32
    %67 = vector.broadcast %cst_48 : f32 to vector<8x128xf32>
    %68 = arith.maximumf %66, %67 : vector<8x128xf32>
    %c0_49 = arith.constant 0 : index
    %c0_50 = arith.constant 0 : index
    %69 = vector.load %arg15[%c0_49, %c0_50] : memref<128x128xf32, #tpu.memory_space<vmem>>, vector<128x128xf32>
    %cst_51 = arith.constant dense<0.000000e+00> : vector<8x128xf32>
    %70 = tpu.matmul %68, %69, %cst_51 {dimension_numbers = #tpu.dot_dimension_numbers<[1], [0], [0], [1], [0, 0, 1, 1], [], []>} : vector<8x128xf32>, vector<128x128xf32>, vector<8x128xf32> -> vector<8x128xf32>
    %c0_52 = arith.constant 0 : index
    %c0_53 = arith.constant 0 : index
    %71 = vector.load %arg16[%c0_52, %c0_53] : memref<1x128xf32, #tpu.memory_space<vmem>>, vector<1x128xf32>
    %72 = vector.broadcast %71 : vector<1x128xf32> to vector<8x128xf32>
    %73 = arith.addf %70, %72 : vector<8x128xf32>
    %cst_54 = arith.constant 0.000000e+00 : f32
    %74 = vector.broadcast %cst_54 : f32 to vector<8x128xf32>
    %75 = arith.maximumf %73, %74 : vector<8x128xf32>
    %c0_55 = arith.constant 0 : index
    %c0_56 = arith.constant 0 : index
    %76 = vector.load %arg17[%c0_55, %c0_56] : memref<8x128xf32, #tpu.memory_space<vmem>>, vector<8x128xf32>
    tpu.vector_store %arg17[%c0_55, %c0_56], %75 {strides = array<i32>} : memref<8x128xf32, #tpu.memory_space<vmem>>, vector<8x128xf32>,
    return
  }
}

</mosaic_0001>

<bundles_post_ra>
// kernel: tpu_custom_call.1
= control target key start
LH: loop header
LB: loop body
LE: loop exit
PB: predicated region body
PF: predicated region fallthrough
CT: control target
= control target key end

     0   :  { %s1367_s0 = inlined_call_operand.vmem [shape: s32[16,2], index: 0, kind: input, shape index: {}]   ;;  %s1368_s1 = inlined_call_operand.hbm [shape: f32[8,32], index: 1, kind: input, shape index: {}]   ;;  %s1369_s2 = inlined_call_operand.vmem [shape: f32[16,32], index: 2, kind: input, shape index: {}]   ;;  %s1370_s3 = inlined_call_operand.hbm [shape: f32[32,128], index: 3, kind: input, shape index: {}]   ;;  %s1371_s4 = inlined_call_operand.hbm [shape: f32[32,128], index: 4, kind: input, shape index: {}]   ;;  %s1372_s5 = inlined_call_operand.hbm [shape: f32[32,128], index: 5, kind: input, shape index: {}]   ;;  %s1373_s6 = inlined_call_operand.vmem [shape: f32[1,128], index: 6, kind: input, shape index: {}]   ;;  %s1374_s7 = inlined_call_operand.hbm [shape: f32[128,128], index: 7, kind: input, shape index: {}]   ;;  %s1375_s8 = inlined_call_operand.vmem [shape: f32[1,128], index: 8, kind: input, shape index: {}]   ;;  %s1376_s9 = inlined_call_operand.hbm [shape: f32[128,128], index: 9, kind: input, shape index: {}]   ;;  %s1377_s10 = inlined_call_operand.vmem [shape: f32[1,128], index: 10, kind: input, shape index: {}]   ;;  %s1378_s11 = inlined_call_operand.hbm [shape: f32[128,128], index: 11, kind: input, shape index: {}]   ;;  %s1379_s12 = inlined_call_operand.vmem [shape: f32[1,128], index: 12, kind: input, shape index: {}]   ;;  %s1380_s13 = inlined_call_operand.hbm [shape: f32[128,128], index: 13, kind: input, shape index: {}]   ;;  %s1381_s14 = inlined_call_operand.vmem [shape: f32[1,128], index: 14, kind: input, shape index: {}]   ;;  %s1382_s15 = inlined_call_operand.hbm [shape: f32[128,128], index: 15, kind: input, shape index: {}]   ;;  %s1383_s16 = inlined_call_operand.vmem [shape: f32[1,128], index: 16, kind: input, shape index: {}]   ;;  %s1384_s17 = inlined_call_operand.hbm [shape: f32[8,128], index: 17, kind: output, shape index: {0}]   ;;  %s1385_s18 = inlined_call_operand.hbm [shape: f32[16,128], index: 18, kind: output, shape index: {1}]  }
   0x1   :  { %1388 = sst [smem:[#allocation27_spill]] %s1367_s0 }
   0x2   :  { %1389 = sst [smem:[#allocation28_spill]] %s1368_s1 }
   0x3   :  { %1390 = sst [smem:[#allocation29_spill]] %s1369_s2 }
   0x4   :  { %24 = vsyncpa [#allocation3], 0 }
   0x5   :  { %25 = vsyncpa [#allocation6], 0 }
   0x6   :  { %26 = vsyncpa [#allocation9], 0 }
   0x7   :  { %27 = vsyncpa [#allocation12], 0 }
   0x8   :  { %28 = vsyncpa [#allocation15], 0 }
   0x9   :  { %29 = vsyncpa [#allocation4], 0  ;;  %s50_s29 = sshll.u32 %s1370_s3, 4  ;;  %s51_s29 = int_to_ptr.hbm [resolvable:$true] %s50_s29 }
   0xa   :  { %30 = vsyncpa [#allocation19], 0  ;;  %s1152_s30 = smov [#allocation5]   ;;  %s76_s20 = sshll.u32 %s1372_s5, 4  ;;  %s77_s20 = int_to_ptr.hbm [resolvable:$true] %s76_s20 }
   0xb   :  { %s52_s0 = sshll.u32 %s1152_s30, 4  ;;  %s1153_s21 = smov 128   ;;  %s53_s0 = int_to_ptr.vmem [resolvable:$true] %s52_s0 }
   0xc   :  { %s1154_s22 = smov 8   ;;  %s1155_s2 = smov [#allocation8]  }
   0xd   :  { %58 = dma.hbm_to_vmem [thread:$0]  %s51_s29, 512, %s53_s0, [#allocation6], %s1153_s21, %s1153_s21, %s1154_s22  }
   0xe   :  { %s78_s23 = sshll.u32 %s1155_s2, 4  ;;  %s106_s25 = sshll.u32 %s1376_s9, 4  ;;  %s79_s23 = int_to_ptr.vmem [resolvable:$true] %s78_s23  ;;  %s107_s25 = int_to_ptr.hbm [resolvable:$true] %s106_s25 }
   0xf   :  { %84 = dma.hbm_to_vmem [thread:$0]  %s77_s20, 512, %s79_s23, [#allocation9], %s1153_s21, %s1153_s21, %s1154_s22  }
  0x10   :  { %s136_s27 = sshll.u32 %s1380_s13, 4  ;;  %s1156_s28 = smov [#allocation11]   ;;  %s137_s27 = int_to_ptr.hbm [resolvable:$true] %s136_s27 }
  0x11   :  { %s108_s30 = sshll.u32 %s1156_s28, 4  ;;  %s1157_s29 = smov [#allocation14]   ;;  %s109_s30 = int_to_ptr.vmem [resolvable:$true] %s108_s30 }
  0x12   :  { %114 = dma.hbm_to_vmem [thread:$0]  %s107_s25, 2048, %s109_s30, [#allocation12], %s1153_s21, %s1153_s21, %s1154_s22  }
  0x13   :  { %s138_s9 = sshll.u32 %s1157_s29, 4  ;;  %s1391_s1 = sld [smem:[#allocation28_spill]]  ;;  %s139_s9 = int_to_ptr.vmem [resolvable:$true] %s138_s9 }
  0x14   :  { %144 = dma.hbm_to_vmem [thread:$0]  %s137_s27, 2048, %s139_s9, [#allocation15], %s1153_s21, %s1153_s21, %s1154_s22  }
  0x15   :  { %s63_s23 = sshll.u32 %s1371_s4, 4  ;;  %s1158_s24 = smov [#allocation2]   ;;  %s64_s23 = int_to_ptr.hbm [resolvable:$true] %s63_s23 }
  0x16   :  { %s40_s3 = sshll.u32 %s1158_s24, 4  ;;  %s1159_s25 = smov [#allocation7]   ;;  %s41_s3 = int_to_ptr.vmem [resolvable:$true] %s40_s3 }
  0x17   :  { %s65_s5 = sshll.u32 %s1159_s25, 4  ;;  %s91_s30 = sshll.u32 %s1374_s7, 4  ;;  %s66_s5 = int_to_ptr.vmem [resolvable:$true] %s65_s5  ;;  %s92_s30 = int_to_ptr.hbm [resolvable:$true] %s91_s30 }
  0x18   :  { %71 = dma.hbm_to_vmem [thread:$0]  %s64_s23, 512, %s66_s5, [#allocation6], %s1153_s21, %s1153_s21, %s1154_s22  }
  0x19   :  { %s38_s2 = sshll.u32 %s1391_s1, 4  ;;  %s121_s4 = sshll.u32 %s1378_s11, 4  ;;  %s39_s2 = int_to_ptr.hbm [resolvable:$true] %s38_s2  ;;  %s122_s4 = int_to_ptr.hbm [resolvable:$true] %s121_s4 }
  0x1a   :  { %43 = dma.hbm_to_vmem [thread:$0]  %s39_s2, 128, %s41_s3, [#allocation3]  }
  0x1b   :  { %s1160_s9 = smov [#allocation10]   ;;  %s1161_s19 = smov [#allocation13]  }
  0x1c   :  { %s93_s0 = sshll.u32 %s1160_s9, 4  ;;  %s123_s7 = sshll.u32 %s1161_s19, 4  ;;  %s94_s0 = int_to_ptr.vmem [resolvable:$true] %s93_s0  ;;  %s124_s7 = int_to_ptr.vmem [resolvable:$true] %s123_s7 }
  0x1d   :  { %99 = dma.hbm_to_vmem [thread:$0]  %s92_s30, 2048, %s94_s0, [#allocation9], %s1153_s21, %s1153_s21, %s1154_s22  }
  0x1e   :  { %s151_s13 = sshll.u32 %s1382_s15, 4  ;;  %s1162_s11 = smov [#allocation16]   ;;  %s152_s13 = int_to_ptr.hbm [resolvable:$true] %s151_s13 }
  0x1f   :  { %129 = dma.hbm_to_vmem [thread:$0]  %s122_s4, 2048, %s124_s7, [#allocation12], %s1153_s21, %s1153_s21, %s1154_s22  }
  0x20   :  { %s153_s20 = sshll.u32 %s1162_s11, 4  ;;  %s154_s20 = int_to_ptr.vmem [resolvable:$true] %s153_s20 }
  0x21   :  { %159 = dma.hbm_to_vmem [thread:$0]  %s152_s13, 2048, %s154_s20, [#allocation15], %s1153_s21, %s1153_s21, %s1154_s22  }
  0x22   :  { %1138 = dma.done.wait [#allocation3], 128  }
  0x23   :  { %1139 = vsyncadd [#allocation3], 4294967168 }
  0x24   :  { %1140 = dma.done.wait [#allocation6], 1024  }
  0x25   :  { %1141 = vsyncadd [#allocation6], 4294966272 }
  0x26   :  { %1142 = dma.done.wait [#allocation9], 2560  }
  0x27   :  { %1143 = vsyncadd [#allocation9], 4294964736 }
  0x28   :  { %1144 = dma.done.wait [#allocation12], 4096  }
  0x29   :  { %1145 = vsyncadd [#allocation12], 4294963200 }
  0x2a   :  { %1146 = dma.done.wait [#allocation15], 4096  }
  0x2b   :  { %1147 = vsyncadd [#allocation15], 4294963200  ;;  %v1163_v0 = vmov 1   ;;  %v1164_v1 = vmov 0   ;;  %v230_v2 = vld [vmem:[#allocation5 + $0x18] sm:$0xff]  ;;  %v229_v3 = vld [vmem:[#allocation5 + $0x10] sm:$0xff]  ;;  %v200_v19 = vlaneseq }
  0x2c   :  { %864 = vset.pattern.permute.xlu1 %v1163_v0  ;;  %863 = vset.pattern.permute.xlu0 %v1164_v1  ;;  %v228_v4 = vld [vmem:[#allocation5 + $0x8] sm:$0xff]  ;;  %s1392_s24 = sld [smem:[#allocation27_spill]]  ;;  %v227_v6 = vld [vmem:[#allocation5] sm:$0xff]  ;;  %v284_v7 = vld [vmem:[#allocation7 + $0x18] sm:$0xff]  ;;  %vm231_vm0 = vcmask 261120   ;;  %v1165_v23 = vmov 0.0  }
  0x2d   :  { %247 = vmatpush.msra.mxu0 %v230_v2  ;;  %v226_v8 = vld [vmem:[#allocation2] sm:$0xff]  ;;  %303 = vmatpush.msra.mxu2 %v284_v7  ;;  %v283_v10 = vld [vmem:[#allocation7 + $0x10] sm:$0xff]  ;;  %v282_v11 = vld [vmem:[#allocation7 + $0x8] sm:$0xff]  ;;  %s1393_s28 = sld [smem:[#allocation29_spill]]  ;;  %v201_v20 = vand.u32 127, %v200_v19  ;;  %vm314_vm5 = vcmask 64512  }
  0x2e   :  { %v258_v9 = vld [vmem:[#allocation8 + $0x18] sm:$0xff]  ;;  %v281_v12 = vld [vmem:[#allocation7] sm:$0xff]  ;;  %v257_v13 = vld [vmem:[#allocation8 + $0x10] sm:$0xff]  ;;  %vm552_vm6 = vcmask 130048   ;;  %s809_s20 = sshll.u32 %s1385_s18, 4  ;;  %s799_s5 = sshll.u32 %s1384_s17, 4  ;;  %s810_s20 = int_to_ptr.hbm [resolvable:$true] %s809_s20  ;;  %s800_s5 = int_to_ptr.hbm [resolvable:$true] %s799_s5 }
  0x2f   :  { %248 = vmatpush.msra.mxu0 %v229_v3  ;;  %304 = vmatpush.msra.mxu2 %v283_v10  ;;  %v256_v16 = vld [vmem:[#allocation8 + $0x8] sm:$0xff]  ;;  %v255_v17 = vld [vmem:[#allocation8] sm:$0xff]  ;;  %v398_v25 = vld [vmem:[#allocation10 + $0x78] sm:$0xff] }
  0x30   :  { %v443_v26 = vld [vmem:[#allocation11 + $0x78] sm:$0xff]  ;;  %403 = vmatpush.msra.mxu3 %v398_v25  ;;  %v397_v28 = vld [vmem:[#allocation10 + $0x70] sm:$0xff]  ;;  %v396_v31 = vld [vmem:[#allocation10 + $0x68] sm:$0xff] }
  0x31   :  { %249 = vmatpush.msra.mxu0 %v228_v4  ;;  %305 = vmatpush.msra.mxu2 %v282_v11  ;;  %v442_v29 = vld [vmem:[#allocation11 + $0x70] sm:$0xff]  ;;  %v441_v32 = vld [vmem:[#allocation11 + $0x68] sm:$0xff]  ;;  %v395_v33 = vld [vmem:[#allocation10 + $0x60] sm:$0xff] }
  0x32   :  { %v198_v5 = vld [vmem:[%s1392_s24] sm:$0xff]  ;;  %v199_v14 = vld [vmem:[%s1392_s24 + $0x8] sm:$0xff]  ;;  %448 = vmatpush.msra.mxu1 %v443_v26  ;;  %404 = vmatpush.msra.mxu3 %v397_v28  ;;  %v393_v40 = vld [vmem:[#allocation10 + $0x50] sm:$0xff] }
  0x33   :  { %215 = vperm.xlu1 %864, %v198_v5   ;;  %203 = vperm.xlu0 %863, %v198_v5   ;;  %v279_v15 = vld [vmem:[%s1393_s28] sm:$0xff]  ;;  %v280_v18 = vld [vmem:[%s1393_s28 + $0x8] sm:$0xff]  ;;  %v438_v42 = vld [vmem:[#allocation11 + $0x50] sm:$0xff] }
  0x34   :  { %250 = vmatpush.msra.mxu0 %v227_v6  ;;  %306 = vmatpush.msra.mxu2 %v281_v12  ;;  %v440_v34 = vld [vmem:[#allocation11 + $0x60] sm:$0xff]  ;;  %v394_v36 = vld [vmem:[#allocation10 + $0x58] sm:$0xff]  ;;  %v392_v44 = vld [vmem:[#allocation10 + $0x48] sm:$0xff] }
  0x35   :  { %835 = vmatmul.msk.f32.vlgmr.msra.gmra.mxu0 %vm231_vm0, %v226_v8  ;;  %837 = vmatmul.msk.f32.vlgmr.msra.gmra.mxu2 %vm231_vm0, %v279_v15  ;;  %v439_v38 = vld [vmem:[#allocation11 + $0x58] sm:$0xff]  ;;  %v437_v45 = vld [vmem:[#allocation11 + $0x48] sm:$0xff]  ;;  %v487_v48 = vld [vmem:[#allocation13 + $0x70] sm:$0xff] }
  0x36   :  { %271 = vmatpush.msrb.mxu0 %v258_v9  ;;  %449 = vmatpush.msra.mxu1 %v442_v29  ;;  %v488_v47 = vld [vmem:[#allocation13 + $0x78] sm:$0xff]  ;;  %v486_v49 = vld [vmem:[#allocation13 + $0x68] sm:$0xff]  ;;  %v485_v50 = vld [vmem:[#allocation13 + $0x60] sm:$0xff] }
  0x37   :  { %405 = vmatpush.msra.mxu3 %v396_v31  ;;  %v484_v52 = vld [vmem:[#allocation13 + $0x58] sm:$0xff]  ;;  %v483_v53 = vld [vmem:[#allocation13 + $0x50] sm:$0xff]  ;;  %v482_v54 = vld [vmem:[#allocation13 + $0x48] sm:$0xff] }
  0x38   :  { %272 = vmatpush.msrb.mxu0 %v257_v13  ;;  %450 = vmatpush.msra.mxu1 %v441_v32  ;;  %v391_v55 = vld [vmem:[#allocation10 + $0x40] sm:$0xff]  ;;  %v390_v58 = vld [vmem:[#allocation10 + $0x38] sm:$0xff]  ;;  %v389_v61 = vld [vmem:[#allocation10 + $0x30] sm:$0xff] }
  0x39   :  { %406 = vmatpush.msra.mxu3 %v395_v33  ;;  %v436_v56 = vld [vmem:[#allocation11 + $0x40] sm:$0xff]  ;;  %v435_v59 = vld [vmem:[#allocation11 + $0x38] sm:$0xff]  ;;  %v434_v62 = vld [vmem:[#allocation11 + $0x30] sm:$0xff] }
  0x3a   :  { %273 = vmatpush.msrb.mxu0 %v256_v16  ;;  %451 = vmatpush.msra.mxu1 %v440_v34  ;;  %v481_v57 = vld [vmem:[#allocation13 + $0x40] sm:$0xff]  ;;  %v480_v60 = vld [vmem:[#allocation13 + $0x38] sm:$0xff]  ;;  %v479_v63 = vld [vmem:[#allocation13 + $0x30] sm:$0xff] }
  0x3b   :  { %218 = vperm.xlu1 %864, %v199_v14   ;;  %206 = vperm.xlu0 %863, %v199_v14   ;;  %v388_v0 = vld [vmem:[#allocation10 + $0x28] sm:$0xff]  ;;  %v387_v4 = vld [vmem:[#allocation10 + $0x20] sm:$0xff]  ;;  %v386_v7 = vld [vmem:[#allocation10 + $0x18] sm:$0xff] }
  0x3c   :  { %274 = vmatpush.msrb.mxu0 %v255_v17  ;;  %407 = vmatpush.msra.mxu3 %v394_v36  ;;  %v433_v2 = vld [vmem:[#allocation11 + $0x28] sm:$0xff]  ;;  %v432_v5 = vld [vmem:[#allocation11 + $0x20] sm:$0xff]  ;;  %v476_v9 = vld [vmem:[#allocation13 + $0x18] sm:$0xff] }
  0x3d   :  { %836 = vmatmul.msk.f32.vlgmr.msrb.gmra.mxu0 %vm231_vm0, %v226_v8  ;;  %838 = vmatmul.msk.f32.gmra.mxu2 %vm231_vm0, %v280_v18  ;;  %v478_v3 = vld [vmem:[#allocation13 + $0x28] sm:$0xff]  ;;  %v477_v6 = vld [vmem:[#allocation13 + $0x20] sm:$0xff]  ;;  %v431_v8 = vld [vmem:[#allocation11 + $0x18] sm:$0xff] }
  0x3e   :  { %452 = vmatpush.msra.mxu1 %v439_v38  ;;  %408 = vmatpush.msra.mxu3 %v393_v40  ;;  %v385_v10 = vld [vmem:[#allocation10 + $0x10] sm:$0xff]  ;;  %v384_v13 = vld [vmem:[#allocation10 + $0x8] sm:$0xff]  ;;  %v383_v15 = vld [vmem:[#allocation10] sm:$0xff] }
  0x3f   :  { %v430_v11 = vld [vmem:[#allocation11 + $0x10] sm:$0xff]  ;;  %v474_v14 = vld [vmem:[#allocation13 + $0x8] sm:$0xff]  ;;  %v428_v16 = vld [vmem:[#allocation11] sm:$0xff] }
  0x40   :  { %453 = vmatpush.msra.mxu1 %v438_v42  ;;  %409 = vmatpush.msra.mxu3 %v392_v44  ;;  %v475_v12 = vld [vmem:[#allocation13 + $0x10] sm:$0xff]  ;;  %v473_v17 = vld [vmem:[#allocation13] sm:$0xff]  ;;  %v867_v33 = vld [vmem:[%s1377_s10] ss:$0 sm:$0xff] }
  0x41   :  { %v869_v42 = vld [vmem:[%s1379_s12] ss:$0 sm:$0xff]  ;;  %s1167_s12 = smov [#allocation18]  }
  0x42   :  { %454 = vmatpush.msra.mxu1 %v437_v45  ;;  %410 = vmatpush.msra.mxu3 %v391_v55  ;;  %v868_v45 = vld [vmem:[%s1375_s8] ss:$0 sm:$0xff]  ;;  %v1166_v55 = vmov 1.0   ;;  %s807_s2 = sshll.u32 %s1167_s12, 4  ;;  %s808_s2 = int_to_ptr.vmem [resolvable:$true] %s807_s2 }
  0x44   :  { %455 = vmatpush.msra.mxu1 %v436_v56  ;;  %411 = vmatpush.msra.mxu3 %v390_v58 }
  0x46   :  { %456 = vmatpush.msra.mxu1 %v435_v59  ;;  %412 = vmatpush.msra.mxu3 %v389_v61  ;;  %v724_v59 = vld [vmem:[#allocation14 + $0x78] sm:$0xff]  ;;  %v722_v61 = vld [vmem:[#allocation14 + $0x68] sm:$0xff] }
  0x48   :  { %457 = vmatpush.msra.mxu1 %v434_v62  ;;  %413 = vmatpush.msra.mxu3 %v388_v0 }
  0x4a   :  { %458 = vmatpush.msra.mxu1 %v433_v2  ;;  %414 = vmatpush.msra.mxu3 %v387_v4  ;;  %v720_v2 = vld [vmem:[#allocation14 + $0x58] sm:$0xff]  ;;  %v718_v4 = vld [vmem:[#allocation14 + $0x48] sm:$0xff] }
  0x4c   :  { %459 = vmatpush.msra.mxu1 %v432_v5  ;;  %415 = vmatpush.msra.mxu3 %v386_v7 }
  0x4e   :  { %460 = vmatpush.msra.mxu1 %v431_v8  ;;  %416 = vmatpush.msra.mxu3 %v385_v10  ;;  %v716_v8 = vld [vmem:[#allocation14 + $0x38] sm:$0xff]  ;;  %v714_v10 = vld [vmem:[#allocation14 + $0x28] sm:$0xff] }
  0x50   :  { %461 = vmatpush.msra.mxu1 %v430_v11  ;;  %417 = vmatpush.msra.mxu3 %v384_v13  ;;  %v713_v11 = vld [vmem:[#allocation14 + $0x20] sm:$0xff] }
  0x52   :  { %418 = vmatpush.msra.mxu3 %v383_v15  ;;  %v711_v15 = vld [vmem:[#allocation14 + $0x10] sm:$0xff] }
  0x54   :  { %729 = vmatpush.msrb.mxu3 %v724_v59 }
  0xa5   :  { %v216_v21 = vpop.permute.xlu1 %215  ;;  %v204_v22 = vpop.permute.xlu0 %203 }
  0xa6   :  { %vm220_vm1 = vcmp.eq.s32.totalorder %v201_v20, %v216_v21  ;;  %vm208_vm2 = vcmp.eq.s32.totalorder %v201_v20, %v204_v22  ;;  %v866_v22 = vld [vmem:[%s1373_s6] ss:$0 sm:$0xff] }
  0xa7   :  { %v833_v24 = vsel %vm220_vm1, 1.0, %v1165_v23  ;;  %v831_v27 = vsel %vm208_vm2, 1.0, %v1165_v23 }
  0xa8   :  { %520 = vxpose.xlu2.b32.start [1/2] (short) (narrow) %v833_v24, 8  ;;  %v631_v30 = vadd.f32 %v833_v24, %v831_v27  ;;  %576 = vxpose.xlu0.b32.start [1/2] (short) (narrow) %v831_v27, 8 }
  0xaa   :  { %633 = vxpose.xlu1.b32.start [1/2] (short) (narrow) %v631_v30, 8 }
  0xad   :  { %v219_v35 = vpop.permute.xlu1 %218  ;;  %v207_v37 = vpop.permute.xlu0 %206 }
  0xae   :  { %vm221_vm3 = vcmp.eq.s32.totalorder %v201_v20, %v219_v35  ;;  %vm209_vm4 = vcmp.eq.s32.totalorder %v201_v20, %v207_v37 }
  0xaf   :  { %v834_v39 = vsel %vm221_vm3, 1.0, %v1165_v23  ;;  %v832_v41 = vsel %vm209_vm4, 1.0, %v1165_v23 }
  0xb0   :  { %521 = vxpose.xlu2.b32.end [2/2] (short) (narrow) %v834_v39, 8  ;;  %v632_v43 = vadd.f32 %v834_v39, %v832_v41  ;;  %577 = vxpose.xlu0.b32.end [2/2] (short) (narrow) %v832_v41, 8 }
  0xb2   :  { %634 = vxpose.xlu1.b32.end [2/2] (short) (narrow) %v632_v43, 8  ;;  %v252_v46 = vpop.f32.mrf.mxu0 }
  0xb3   :  { %336 = vmatpush.msrb.mxu2 %v252_v46 }
  0xb4   :  { %839 = vmatmul.msk.f32.vlgmr.msrb.gmra.mxu2 %vm314_vm5, %v831_v27 }
  0xb5   :  { %493 = vmatpush.msra.mxu2 %v488_v47 }
  0xb7   :  { %494 = vmatpush.msra.mxu2 %v487_v48 }
  0xb8   :  { %v308_v18 = vpop.f32.mrf.mxu2 }
  0xb9   :  { %495 = vmatpush.msra.mxu2 %v486_v49 }
  0xba   :  { %v276_v51 = vpop.f32.mrf.mxu0 }
  0xbb   :  { %365 = vmatpush.msra.mxu0 %v276_v51  ;;  %496 = vmatpush.msra.mxu2 %v485_v50 }
  0xbc   :  { %840 = vmatmul.msk.f32.gmra.mxu2 %vm314_vm5, %v832_v41  ;;  %841 = vmatmul.msk.f32.vlgmr.msra.gmra.mxu0 %vm314_vm5, %v833_v24 }
  0xbd   :  { %497 = vmatpush.msra.mxu2 %v484_v52 }
  0xbf   :  { %498 = vmatpush.msra.mxu2 %v483_v53 }
  0xc0   :  { %v311_v19 = vpop.f32.mrf.mxu2 }
  0xc1   :  { %499 = vmatpush.msra.mxu2 %v482_v54 }
  0xc3   :  { %500 = vmatpush.msra.mxu2 %v481_v57 }
  0xc4   :  { %842 = vmatmul.msk.f32.gmra.mxu0 %vm314_vm5, %v834_v39 }
  0xc5   :  { %501 = vmatpush.msra.mxu2 %v480_v60  ;;  %v723_v60 = vld [vmem:[#allocation14 + $0x70] sm:$0xff] }
  0xc6   :  { %730 = vmatpush.msrb.mxu3 %v723_v60 }
  0xc7   :  { %502 = vmatpush.msra.mxu2 %v479_v63  ;;  %v721_v63 = vld [vmem:[#allocation14 + $0x60] sm:$0xff] }
  0xc8   :  { %731 = vmatpush.msrb.mxu3 %v722_v61 }
  0xc9   :  { %503 = vmatpush.msra.mxu2 %v478_v3  ;;  %v719_v3 = vld [vmem:[#allocation14 + $0x50] sm:$0xff] }
  0xca   :  { %732 = vmatpush.msrb.mxu3 %v721_v63 }
  0xcb   :  { %504 = vmatpush.msra.mxu2 %v477_v6  ;;  %v717_v6 = vld [vmem:[#allocation14 + $0x40] sm:$0xff] }
  0xcc   :  { %733 = vmatpush.msrb.mxu3 %v720_v2 }
  0xcd   :  { %505 = vmatpush.msra.mxu2 %v476_v9  ;;  %v715_v9 = vld [vmem:[#allocation14 + $0x30] sm:$0xff] }
  0xce   :  { %734 = vmatpush.msrb.mxu3 %v719_v3 }
  0xcf   :  { %506 = vmatpush.msra.mxu2 %v475_v12 }
  0xd0   :  { %735 = vmatpush.msrb.mxu3 %v718_v4 }
  0xd1   :  { %507 = vmatpush.msra.mxu2 %v474_v14 }
  0xd2   :  { %736 = vmatpush.msrb.mxu3 %v717_v6 }
  0xd3   :  { %508 = vmatpush.msra.mxu2 %v473_v17 }
  0xd4   :  { %737 = vmatpush.msrb.mxu3 %v716_v8 }
  0xd6   :  { %738 = vmatpush.msrb.mxu3 %v715_v9 }
  0xd8   :  { %739 = vmatpush.msrb.mxu3 %v714_v10 }
  0xda   :  { %740 = vmatpush.msrb.mxu3 %v713_v11 }
 0x112   :  { %865 = vset.pattern.permute.xlu2 %v1164_v1  ;;  %v429_v1 = vld [vmem:[#allocation11 + $0x8] sm:$0xff] }
 0x113   :  { %462 = vmatpush.msra.mxu1 %v429_v1  ;;  %v712_v1 = vld [vmem:[#allocation14 + $0x18] sm:$0xff] }
 0x114   :  { %741 = vmatpush.msrb.mxu3 %v712_v1 }
 0x115   :  { %463 = vmatpush.msra.mxu1 %v428_v16 }
 0x116   :  { %742 = vmatpush.msrb.mxu3 %v711_v15 }
 0x137   :  { %v338_v20 = vpop.f32.mrf.mxu2 }
 0x138   :  { %v339_v21 = vadd.f32 %v338_v20, %v308_v18 }
 0x139   :  { %v367_v23 = vpop.f32.mrf.mxu0 }
 0x13a   :  { %v373_v24 = vadd.f32 %v367_v23, %v339_v21 }
 0x13c   :  { %v379_v25 = vadd.f32 %v866_v22, %v373_v24  ;;  %v709_v24 = vld [vmem:[#allocation14] sm:$0xff] }
 0x13e   :  { %v381_v26 = vmax.f32 %v379_v25, 0.0  ;;  %v765_v25 = vld [vmem:[#allocation16 + $0x78] sm:$0xff] }
 0x13f   :  { %v341_v27 = vpop.f32.mrf.mxu2  ;;  %770 = vmatpush.msrb.mxu1 %v765_v25 }
 0x140   :  { %v342_v28 = vadd.f32 %v341_v27, %v311_v19  ;;  %419 = vmatmul.f32.vlgmr.msra.gmra.mxu3 %v381_v26  ;;  %464 = vmatmul.f32.vlgmr.msra.gmra.mxu1 %v381_v26  ;;  %v710_v19 = vld [vmem:[#allocation14 + $0x8] sm:$0xff] }
 0x141   :  { %509 = vmatmul.f32.vlgmr.msra.gmra.mxu2 %v381_v26  ;;  %v370_v29 = vpop.f32.mrf.mxu0  ;;  %v536_v52 = vpop.trf.xlu2  ;;  %743 = vmatpush.msrb.mxu3 %v710_v19  ;;  %v764_v26 = vld [vmem:[#allocation16 + $0x70] sm:$0xff]  ;;  %v763_v27 = vld [vmem:[#allocation16 + $0x68] sm:$0xff] }
 0x142   :  { %v374_v30 = vadd.f32 %v370_v29, %v342_v28  ;;  %771 = vmatpush.msrb.mxu1 %v764_v26  ;;  %v762_v28 = vld [vmem:[#allocation16 + $0x60] sm:$0xff]  ;;  %v761_v29 = vld [vmem:[#allocation16 + $0x58] sm:$0xff] }
 0x143   :  { %744 = vmatpush.msrb.mxu3 %v709_v24 }
 0x144   :  { %v380_v31 = vadd.f32 %v866_v22, %v374_v30  ;;  %772 = vmatpush.msrb.mxu1 %v763_v27  ;;  %v760_v30 = vld [vmem:[#allocation16 + $0x50] sm:$0xff] }
 0x146   :  { %v382_v32 = vmax.f32 %v380_v31, 0.0  ;;  %773 = vmatpush.msrb.mxu1 %v762_v28  ;;  %v759_v31 = vld [vmem:[#allocation16 + $0x48] sm:$0xff] }
 0x148   :  { %422 = vmatmul.f32.gmra.mxu3 %v382_v32  ;;  %467 = vmatmul.f32.gmra.mxu1 %v382_v32 }
 0x149   :  { %512 = vmatmul.f32.gmra.mxu2 %v382_v32  ;;  %774 = vmatpush.msrb.mxu1 %v761_v29  ;;  %v758_v32 = vld [vmem:[#allocation16 + $0x40] sm:$0xff] }
 0x14b   :  { %775 = vmatpush.msrb.mxu1 %v760_v30 }
 0x14c   :  { %v592_v56 = vpop.trf.xlu0 }
 0x14d   :  { %776 = vmatpush.msrb.mxu1 %v759_v31 }
 0x14e   :  { %v649_v57 = vpop.trf.xlu1 }
 0x14f   :  { %777 = vmatpush.msrb.mxu1 %v758_v32 }
 0x1bd   :  { %v465_v34 = vpop.f32.mrf.mxu1 }
 0x1be   :  { %v466_v35 = vadd.f32 %v867_v33, %v465_v34  ;;  %v756_v34 = vld [vmem:[#allocation16 + $0x30] sm:$0xff] }
 0x1c0   :  { %v471_v36 = vmax.f32 %v466_v35, 0.0  ;;  %v755_v35 = vld [vmem:[#allocation16 + $0x28] sm:$0xff] }
 0x1c2   :  { %518 = vst [vmem:[#allocation18] sm:$0xff] %v471_v36  ;;  %v754_v36 = vld [vmem:[#allocation16 + $0x20] sm:$0xff] }
 0x1c3   :  { %v420_v37 = vpop.f32.mrf.mxu3 }
 0x1c4   :  { %v510_v38 = vpop.f32.mrf.mxu2  ;;  %v421_v50 = vadd.f32 %v868_v45, %v420_v37  ;;  %v753_v37 = vld [vmem:[#allocation16 + $0x18] sm:$0xff] }
 0x1c5   :  { %v468_v39 = vpop.f32.mrf.mxu1  ;;  %v511_v46 = vadd.f32 %v869_v42, %v510_v38 }
 0x1c6   :  { %v469_v40 = vadd.f32 %v867_v33, %v468_v39  ;;  %v426_v54 = vmax.f32 %v421_v50, 0.0  ;;  %v757_v33 = vld [vmem:[#allocation16 + $0x38] sm:$0xff] }
 0x1c7   :  { %v516_v51 = vmax.f32 %v511_v46, 0.0  ;;  %778 = vmatpush.msrb.mxu1 %v757_v33 }
 0x1c8   :  { %v472_v41 = vmax.f32 %v469_v40, 0.0  ;;  %v752_v40 = vld [vmem:[#allocation16 + $0x10] sm:$0xff] }
 0x1c9   :  { %779 = vmatpush.msrb.mxu1 %v756_v34 }
 0x1ca   :  { %519 = vst [vmem:[#allocation18 + $0x8] sm:$0xff] %v472_v41  ;;  %v751_v41 = vld [vmem:[#allocation16 + $0x8] sm:$0xff] }
 0x1cb   :  { %v423_v43 = vpop.f32.mrf.mxu3  ;;  %780 = vmatpush.msrb.mxu1 %v755_v35  ;;  %815 = dma.vmem_to_hbm [thread:$0]  %s808_s2, 256, %s810_s20, [#allocation19], %s1153_s21, %s1153_s21, %s1154_s22  }
 0x1cc   :  { %v513_v44 = vpop.f32.mrf.mxu2  ;;  %v424_v48 = vadd.f32 %v868_v45, %v423_v43  ;;  %v870_v43 = vld [vmem:[%s1381_s14] ss:$0 sm:$0xff]  ;;  %s1168_s14 = smov [#allocation17]  }
 0x1cd   :  { %v514_v47 = vadd.f32 %v869_v42, %v513_v44  ;;  %781 = vmatpush.msrb.mxu1 %v754_v36  ;;  %v750_v42 = vld [vmem:[#allocation16] sm:$0xff]  ;;  %s797_s24 = sshll.u32 %s1168_s14, 4  ;;  %s798_s24 = int_to_ptr.vmem [resolvable:$true] %s797_s24 }
 0x1ce   :  { %v427_v53 = vmax.f32 %v424_v48, 0.0 }
 0x1cf   :  { %v517_v49 = vmax.f32 %v514_v47, 0.0  ;;  %782 = vmatpush.msrb.mxu1 %v753_v37  ;;  %v871_v47 = vld [vmem:[%s1383_s16] ss:$0 sm:$0xff] }
 0x1d1   :  { %570 = vmatpush.msrb.mxu0 %v517_v49  ;;  %783 = vmatpush.msrb.mxu1 %v752_v40 }
 0x1d3   :  { %571 = vmatpush.msrb.mxu0 %v516_v51  ;;  %784 = vmatpush.msrb.mxu1 %v751_v41 }
 0x1d4   :  { %843 = vmatmul.msk.f32.vlgmr.msrb.gmra.mxu0 %vm552_vm6, %v536_v52 }
 0x1d5   :  { %625 = vmatpush.msra.mxu0 %v427_v53  ;;  %785 = vmatpush.msrb.mxu1 %v750_v42 }
 0x1d7   :  { %626 = vmatpush.msra.mxu0 %v426_v54 }
 0x1d9   :  { %682 = vmatpush.msrb.mxu0 %v1166_v55 }
 0x1db   :  { %683 = vmatpush.msrb.mxu0 %v1166_v55 }
 0x1dc   :  { %844 = vmatmul.msk.f32.vlgmr.msra.gmra.mxu0 %vm552_vm6, %v592_v56 }
 0x1e4   :  { %845 = vmatmul.msk.f32.vlgmr.msrb.gmra.mxu0 %vm552_vm6, %v649_v57 }
 0x251   :  { %v573_v58 = vpop.f32.mrf.mxu0 }
 0x259   :  { %v628_v62 = vpop.f32.mrf.mxu0 }
 0x25a   :  { %v1349_v0 = vadd.f32 %v628_v62, %v573_v58 }
 0x261   :  { %v685_v5 = vpop.f32.mrf.mxu0 }
 0x262   :  { %v688_v7 = vmax.f32 %v685_v5, 1.0 }
 0x264   :  { %872 = vrcp.f32 %v688_v7  ;;  %v700_v16 = vand.u32 2147483648, %v688_v7  ;;  %v698_v18 = vand.u32 2147483647, %v688_v7  ;;  %vm694_vm8 = vweird.f32 %v688_v7 }
 0x266   :  { %v701_v21 = vor.u32 1.1754944e-38, %v700_v16  ;;  %vm699_vm10 = vcmp.eq.f32.partialorder %v698_v18, 8.507059e+37 }
 0x26a   :  { %v873_v12 = vpop.eup %872 }
 0x26b   :  { %v690_v13 = vmul.f32 %v873_v12, %v688_v7  ;;  %vm695_vm7 = vweird.f32 %v873_v12 }
 0x26c   :  { %vm696_vm9 = vmor %vm694_vm8, %vm695_vm7 }
 0x26d   :  { %v691_v14 = vsub.f32 1.0, %v690_v13 }
 0x26f   :  { %v692_v17 = vmul.f32 %v873_v12, %v691_v14 }
 0x271   :  { %v693_v20 = vadd.f32 %v873_v12, %v692_v17 }
 0x273   :  { %v697_v22 = vsel %vm696_vm9, %v873_v12, %v693_v20 }
 0x274   :  { %v702_v23 = vsel %vm699_vm10, %v701_v21, %v697_v22 }
 0x275   :  { %705 = vperm.xlu2 %865, %v702_v23  }
 0x2cf   :  { %v706_v38 = vpop.permute.xlu2 %705 }
 0x2d0   :  { %v708_v39 = vmul.f32 %v706_v38, %v1349_v0 }
 0x2d2   :  { %745 = vmatmul.f32.vlgmr.msrb.gmra.mxu3 %v708_v39 }
 0x355   :  { %v746_v44 = vpop.f32.mrf.mxu3 }
 0x356   :  { %v747_v45 = vadd.f32 %v870_v43, %v746_v44 }
 0x358   :  { %v749_v46 = vmax.f32 %v747_v45, 0.0 }
 0x35a   :  { %786 = vmatmul.f32.vlgmr.msrb.gmra.mxu1 %v749_v46 }
 0x3d7   :  { %v787_v48 = vpop.f32.mrf.mxu1 }
 0x3d8   :  { %v788_v49 = vadd.f32 %v871_v47, %v787_v48 }
 0x3da   :  { %v790_v50 = vmax.f32 %v788_v49, 0.0 }
 0x3dc   :  { %791 = vst [vmem:[#allocation17] sm:$0xff] %v790_v50 }
 0x3dd   :  { %802 = dma.vmem_to_hbm [thread:$0]  %s798_s24, 128, %s800_s5, [#allocation4]  }
 0x3de   :  { %1148 = dma.done.wait [#allocation4], 128  }
 0x3df   :  { %1149 = vsyncadd [#allocation4], 4294967168 }
 0x3e0   :  { %1150 = dma.done.wait [#allocation19], 256  }
 0x3e1   :  { %1151 = vsyncadd [#allocation19], 4294967040 }
 0x3e2   :  { %824 = vsyncpa [#allocation3], 1 }
 0x3e3   :  { %825 = vsyncpa [#allocation6], 1 }
 0x3e4   :  { %826 = vsyncpa [#allocation9], 1 }
 0x3e5   :  { %827 = vsyncpa [#allocation12], 1 }
 0x3e6   :  { %828 = vsyncpa [#allocation15], 1 }
 0x3e7   :  { %829 = vsyncpa [#allocation4], 1 }
 0x3e8   :  { %830 = vsyncpa [#allocation19], 1 }

</bundles_post_ra>
